<compile_context>
chip_gen: v7x
topology: tpu7x:2x2x1
jax: 0.10.0
libtpu: 0.0.40
codegen_flags: <defaults>
</compile_context>

<pallas_src>
import functools

import jax
import jax.numpy as jnp
from jax.experimental import pallas as pl
from jax.experimental.pallas import tpu as pltpu


_SUBLANE = {1: 32, 2: 16, 4: 8}   # sublane tile rows per dtype itemsize (bytes)


def _round_up(x: int, m: int) -> int:
    return -(-x // m) * m


def _chip_generation() -> str:
    """Best-effort TPU generation detection; falls back to v6e defaults."""
    try:
        kind = jax.devices()[0].device_kind.lower()
    except Exception:
        return "v6e"
    if "v5" in kind:
        return "v5e"
    if "v7" in kind:
        return "v7x"
    return "v6e"


def _ce_kernel(logits_ref, target_ref, out_ref, *, n_chunks, ck, ignore_index):
    """One grid step: logits (1, L, TP), targets (1, 1, TP) narrow int.

    Accumulates the per-pixel loss (masked at ignore_index) into the resident
    (1, 1, TP) f32 output block of this core-split slice, one lane chunk at a
    time so the temporaries stay chunk-sized.
    """
    b = pl.program_id(1)
    p = pl.program_id(2)

    # First grid step that touches this output block: zero it once.
    @pl.when(jnp.logical_and(b == 0, p == 0))
    def _():
        out_ref[...] = jnp.zeros_like(out_ref)

    @pl.loop(0, n_chunks)
    def _(c):
        off = pl.multiple_of(c * ck, 128)
        x = logits_ref[0, :, pl.ds(off, ck)]                      # (L, ck) in-dtype
        t = target_ref[0, :, pl.ds(off, ck)].astype(jnp.int32)    # (1, ck)

        # Numerically-stable log-sum-exp over the class (sublane) axis.  The
        # max / subtract stay in the input dtype (bf16 VALU on v6e/v7x); only
        # the values feeding exp/log are promoted to f32.
        m = jnp.max(x, axis=0, keepdims=True)                     # (1, ck)
        xm = x - m                                                # (L, ck)
        if xm.dtype != jnp.float32:
            xm = xm.astype(jnp.float32)
        lse = jnp.log(jnp.sum(jnp.exp(xm), axis=0, keepdims=True))  # (1, ck)

        # Target-class logit (already relative to m) without a gather:
        # one-hot select via iota, so per_px = lse - (x_t - m).
        cls = jax.lax.broadcasted_iota(jnp.int32, xm.shape, 0)    # (L, ck)
        tgt_rel = jnp.sum(jnp.where(cls == t, xm, 0.0), axis=0, keepdims=True)

        # ignore_index pixels (including lane padding) contribute zero.
        valid = (t != ignore_index).astype(jnp.float32)           # (1, ck)
        per_px = (lse - tgt_rel) * valid                          # (1, ck)

        # Lane-dense elementwise accumulation into the resident output chunk.
        out_ref[0, :, pl.ds(off, ck)] += per_px


def cross_entropy_loss(prediction: jax.Array, target: jax.Array, *,
                       ignore_index: int = -100,
                       max_block_bytes: int | None = None,
                       n_split: int | None = None,
                       vmem_cap_bytes: int | None = None) -> jax.Array:
    """prediction: [B, L, H, W] float logits; target: [B, H, W] int -> scalar.

    Matches torch.nn.CrossEntropyLoss(reduction='mean', ignore_index=-100):
    softmax cross-entropy per pixel, averaged over the non-ignored pixels.
    """
    B, L, H, W = prediction.shape
    assert target.shape == (B, H, W)
    P = H * W

    # ---- per-generation configuration ---------------------------------------
    gen = _chip_generation()
    if max_block_bytes is None:
        max_block_bytes = {"v5e": 2 << 20, "v6e": 4 << 20, "v7x": 10 << 20}[gen]
    if n_split is None:
        n_split = 2 if gen == "v7x" else 1          # megacore split only on v7x
    if vmem_cap_bytes is None:
        # Leave headroom under the physical ceiling (128 MiB v5e/v6e, 64 MiB v7x).
        vmem_cap_bytes = (48 << 20) if gen == "v7x" else (64 << 20)
    n_buf_logits = 3 if gen == "v7x" else 2          # deeper pipeline on v7x

    itemsize = jnp.dtype(prediction.dtype).itemsize
    L_pad = _round_up(L, _SUBLANE.get(itemsize, 8))  # sublane-padded class rows

    # ---- lane-axis tile sizing from the real VMEM footprint -----------------
    # Per-lane VMEM bytes of the pipelined blocks: logits buffers (sublane
    # padded) + target buffers (1 row padded to a full 8x32B tile -> 32 B/lane
    # each) + resident f32 output blocks (8 rows -> 32 B/lane each).
    bytes_per_lane = n_buf_logits * L_pad * itemsize + 2 * 32 + 2 * 32
    reserve = 8 << 20                                # chunk temps + internal scratch
    max_lanes_vmem = max(128, ((vmem_cap_bytes - reserve) // bytes_per_lane)
                         // 128 * 128)

    per_core = _round_up(-(-P // n_split), 128)      # ceil(P / n_split), whole lanes
    # Per-step logits bytes target (amortize the ~0.35 us per-step overhead).
    tile_px = max(128, (max_block_bytes // (L_pad * itemsize)) // 128 * 128)
    tile_px = min(tile_px, max_lanes_vmem, per_core)

    ck = 512                                         # lane chunk for in-kernel temporaries
    if tile_px > ck:
        tile_px = (tile_px // ck) * ck
    else:
        ck = tile_px
    n_chunks = tile_px // ck

    per_core = _round_up(per_core, tile_px)
    P_pad = n_split * per_core
    steps_per_core = per_core // tile_px

    # ---- operands: pure views, no transpose ----------------------------------
    logits = prediction.reshape(B, L, P)
    tgt = target.reshape(B, 1, P)

    # Stream targets narrow when class ids + ignore_index fit (HBM traffic cut).
    if L <= 127 and -128 <= ignore_index <= 127:
        tgt_dtype = jnp.int8
    elif L <= 32767 and -32768 <= ignore_index <= 32767:
        tgt_dtype = jnp.int16
    else:
        tgt_dtype = jnp.int32

    if P_pad != P:
        logits = jnp.pad(logits, ((0, 0), (0, 0), (0, P_pad - P)))
        tgt = jnp.pad(tgt, ((0, 0), (0, 0), (0, P_pad - P)),
                      constant_values=ignore_index)

    grid = (n_split, B, steps_per_core)

    def _in_map(c, b, p):
        return (b, 0, c * steps_per_core + p)

    kernel = functools.partial(_ce_kernel, n_chunks=n_chunks, ck=ck,
                               ignore_index=ignore_index)

    def _run(tdtype, buffered):
        if buffered:
            logits_spec = pl.BlockSpec((1, L, tile_px), _in_map,
                                       pipeline_mode=pl.Buffered(n_buf_logits))
        else:
            logits_spec = pl.BlockSpec((1, L, tile_px), _in_map)
        return pl.pallas_call(
            kernel,
            out_shape=jax.ShapeDtypeStruct((n_split, 1, tile_px), jnp.float32),
            grid_spec=pltpu.PrefetchScalarGridSpec(
                num_scalar_prefetch=0,
                grid=grid,
                in_specs=[logits_spec,
                          pl.BlockSpec((1, 1, tile_px), _in_map)],
                out_specs=pl.BlockSpec((1, 1, tile_px),
                                       lambda c, b, p: (c, 0, 0)),
            ),
            compiler_params=pltpu.CompilerParams(
                # leading axis shards pixels across TensorCores (v7x megacore);
                # the other two axes accumulate into a resident output block.
                dimension_semantics=("parallel", "arbitrary", "arbitrary"),
                vmem_limit_bytes=vmem_cap_bytes),
        )(logits, tgt.astype(tdtype))

    # Preferred config first; fall back to plain double-buffering / int32
    # targets if a lowering path is unavailable on this jax/libtpu build.
    attempts = []
    if gen == "v7x" and n_buf_logits > 2:
        attempts.append((tgt_dtype, True))
    attempts.append((tgt_dtype, False))
    if tgt_dtype != jnp.int32:
        attempts.append((jnp.int32, False))

    partials, last_err = None, None
    for td, buf in attempts:
        try:
            partials = _run(td, buf)
            break
        except Exception as e:  # retry with a safer configuration
            last_err = e
    if partials is None:
        raise last_err

    # PyTorch 'mean': divide by the number of non-ignored target pixels.
    # TODO(synk): out-of-range targets (t >= L) silently contribute `lse`
    # instead of raising like PyTorch does.
    n_valid = jnp.sum(target != ignore_index).astype(jnp.float32)
    return jnp.sum(partials) / n_valid


def _reference(prediction, target, ignore_index=-100):
    """Pure-JAX reference matching torch CrossEntropyLoss (mean over valid)."""
    B, L, H, W = prediction.shape
    x = jnp.transpose(prediction, (0, 2, 3, 1)).reshape(-1, L).astype(jnp.float32)
    t = target.reshape(-1)
    valid = t != ignore_index
    logp = jax.nn.log_softmax(x, axis=-1)
    safe_t = jnp.where(valid, t, 0)
    per_px = -jnp.take_along_axis(logp, safe_t[:, None], axis=-1)[:, 0]
    return jnp.sum(jnp.where(valid, per_px, 0.0)) / jnp.sum(valid)


if __name__ == "__main__":
    key = jax.random.PRNGKey(0)
    k1, k2, k3, k4 = jax.random.split(key, 4)

    # Primary case: matches the module's segmentation forward shapes.
    B, L, H, W = 2, 4, 16, 16
    prediction = jax.random.normal(k1, (B, L, H, W), dtype=jnp.float32)
    target = jax.random.randint(k2, (B, H, W), 0, L, dtype=jnp.int32)

    loss = cross_entropy_loss(prediction, target)
    jax.block_until_ready(loss)
    ref = _reference(prediction, target)
    assert jnp.allclose(loss, ref, atol=1e-5, rtol=1e-5), (loss, ref)

    # Ragged case: exercises lane-axis padding / narrow-target path.
    B2, L2, H2, W2 = 1, 5, 9, 9
    pred2 = jax.random.normal(k3, (B2, L2, H2, W2), dtype=jnp.float32)
    tgt2 = jax.random.randint(k4, (B2, H2, W2), 0, L2, dtype=jnp.int32)
    loss2 = cross_entropy_loss(pred2, tgt2)
    jax.block_until_ready(loss2)
    ref2 = _reference(pred2, tgt2)
    assert jnp.allclose(loss2, ref2, atol=1e-5, rtol=1e-5), (loss2, ref2)

    # ignore_index case: masked pixels excluded from both numerator and mean.
    tgt3 = tgt2.at[:, 0, :3].set(-100)
    loss3 = cross_entropy_loss(pred2, tgt3)
    jax.block_until_ready(loss3)
    ref3 = _reference(pred2, tgt3)
    assert jnp.allclose(loss3, ref3, atol=1e-5, rtol=1e-5), (loss3, ref3)

    print("KERNEL_OK")
</pallas_src>

<mosaic_0001>
module attributes {stable_mosaic.version = 11 : i64} {
  func.func @_ce_kernel(%arg0: i32, %arg1: i32, %arg2: i32, %arg3: memref<1x4x256xf32, #tpu.memory_space<vmem>>, %arg4: memref<1x1x256xi8, #tpu.memory_space<vmem>>, %arg5: memref<1x1x256xf32, #tpu.memory_space<vmem>>) attributes {dimension_semantics = [#tpu.dimension_semantics<parallel>, #tpu.dimension_semantics<arbitrary>, #tpu.dimension_semantics<arbitrary>], iteration_bounds = array<i64: 1, 2, 1>, scalar_prefetch = 0 : i64, scratch_operands = 0 : i64, tpu.core_type = #tpu.core_type<tc>, window_params = [{transform_indices = @transform_0, window_bounds = array<i64: 1, 4, 256>}, {transform_indices = @transform_1, window_bounds = array<i64: 1, 1, 256>}, {transform_indices = @transform_2, window_bounds = array<i64: 1, 1, 256>}]} {
    %c0_i32 = arith.constant 0 : i32
    %0 = arith.cmpi eq, %arg1, %c0_i32 : i32
    %c0_i32_0 = arith.constant 0 : i32
    %1 = arith.cmpi eq, %arg2, %c0_i32_0 : i32
    %2 = arith.andi %0, %1 : i1
    %3 = arith.extui %2 : i1 to i32
    %c0_i32_1 = arith.constant 0 : i32
    %4 = arith.cmpi ne, %3, %c0_i32_1 : i32
    scf.if %4 {
      %cst_15 = arith.constant 0.000000e+00 : f32
      %45 = vector.broadcast %cst_15 : f32 to vector<1x1x256xf32>
      %c0_16 = arith.constant 0 : index
      %c0_17 = arith.constant 0 : index
      %c0_18 = arith.constant 0 : index
      %46 = vector.load %arg5[%c0_16, %c0_17, %c0_18] : memref<1x1x256xf32, #tpu.memory_space<vmem>>, vector<1x1x256xf32>
      tpu.vector_store %arg5[%c0_16, %c0_17, %c0_18], %45 {strides = array<i32>} : memref<1x1x256xf32, #tpu.memory_space<vmem>>, vector<1x1x256xf32>,
    } else {
    }
    %c0_i32_2 = arith.constant 0 : i32
    %c1_i32 = arith.constant 1 : i32
    %5 = arith.muli %c0_i32_2, %c1_i32 : i32
    %c0_i32_3 = arith.constant 0 : i32
    %6 = arith.addi %c0_i32_3, %5 : i32
    %c256_i32 = arith.constant 256 : i32
    %7 = arith.muli %6, %c256_i32 : i32
    %8 = tpu.assume_multiple %7, 128 : i32
    %c0 = arith.constant 0 : index
    %c0_4 = arith.constant 0 : index
    %9 = arith.index_cast %8 : i32 to index
    %10 = vector.load %arg3[%c0, %c0_4, %9] : memref<1x4x256xf32, #tpu.memory_space<vmem>>, vector<1x4x256xf32>
    %11 = vector.shape_cast %10 : vector<1x4x256xf32> to vector<4x256xf32>
    %c0_5 = arith.constant 0 : index
    %c0_6 = arith.constant 0 : index
    %12 = arith.index_cast %8 : i32 to index
    %13 = vector.load %arg4[%c0_5, %c0_6, %12] : memref<1x1x256xi8, #tpu.memory_space<vmem>>, vector<1x1x256xi8>
    %14 = vector.shape_cast %13 : vector<1x1x256xi8> to vector<1x256xi8>
    %15 = arith.extsi %14 : vector<1x256xi8> to vector<1x256xi32>
    %cst = arith.constant dense<0xFF800000> : vector<256xf32>
    %16 = vector.multi_reduction <maximumf>, %11, %cst [0] : vector<4x256xf32> to vector<256xf32>
    %17 = vector.shape_cast %16 : vector<256xf32> to vector<1x256xf32>
    %18 = vector.broadcast %17 : vector<1x256xf32> to vector<4x256xf32>
    %19 = arith.subf %11, %18 : vector<4x256xf32>
    %20 = math.exp %19 : vector<4x256xf32>
    %cst_7 = arith.constant dense<0.000000e+00> : vector<256xf32>
    %21 = vector.multi_reduction <add>, %20, %cst_7 [0] : vector<4x256xf32> to vector<256xf32>
    %22 = vector.shape_cast %21 : vector<256xf32> to vector<1x256xf32>
    %23 = math.log %22 : vector<1x256xf32>
    %24 = tpu.iota {dimensions = array<i32: 0>} : vector<4x256xi32>
    %25 = vector.broadcast %15 : vector<1x256xi32> to vector<4x256xi32>
    %26 = arith.cmpi eq, %24, %25 : vector<4x256xi32>
    %cst_8 = arith.constant 0.000000e+00 : f32
    %27 = vector.broadcast %cst_8 : f32 to vector<4x256xf32>
    %28 = arith.select %26, %19, %27 : vector<4x256xi1>, vector<4x256xf32>
    %cst_9 = arith.constant dense<0.000000e+00> : vector<256xf32>
    %29 = vector.multi_reduction <add>, %28, %cst_9 [0] : vector<4x256xf32> to vector<256xf32>
    %30 = vector.shape_cast %29 : vector<256xf32> to vector<1x256xf32>
    %c-100_i32 = arith.constant -100 : i32
    %31 = vector.broadcast %c-100_i32 : i32 to vector<1x256xi32>
    %32 = arith.cmpi ne, %15, %31 : vector<1x256xi32>
    %33 = arith.extui %32 : vector<1x256xi1> to vector<1x256xi32>
    %34 = arith.sitofp %33 : vector<1x256xi32> to vector<1x256xf32>
    %35 = arith.subf %23, %30 : vector<1x256xf32>
    %36 = arith.mulf %35, %34 : vector<1x256xf32>
    %c0_10 = arith.constant 0 : index
    %c0_11 = arith.constant 0 : index
    %37 = arith.index_cast %8 : i32 to index
    %38 = vector.load %arg5[%c0_10, %c0_11, %37] : memref<1x1x256xf32, #tpu.memory_space<vmem>>, vector<1x1x256xf32>
    %39 = vector.shape_cast %38 : vector<1x1x256xf32> to vector<1x256xf32>
    %40 = arith.addf %39, %36 : vector<1x256xf32>
    %c0_12 = arith.constant 0 : index
    %c0_13 = arith.constant 0 : index
    %41 = arith.index_cast %8 : i32 to index
    %42 = vector.load %arg5[%c0_12, %c0_13, %41] : memref<1x1x256xf32, #tpu.memory_space<vmem>>, vector<1x1x256xf32>
    %43 = vector.shape_cast %42 : vector<1x1x256xf32> to vector<1x256xf32>
    %44 = vector.shape_cast %40 : vector<1x256xf32> to vector<1x1x256xf32>
    tpu.vector_store %arg5[%c0_12, %c0_13, %41], %44 {strides = array<i32>} : memref<1x1x256xf32, #tpu.memory_space<vmem>>, vector<1x1x256xf32>,
    %c1_i32_14 = arith.constant 1 : i32
    return
  }
  func.func @transform_0(%arg0: i32, %arg1: i32, %arg2: i32) -> (i32, i32, i32) {
    %c1_i32 = arith.constant 1 : i32
    %0 = arith.muli %arg0, %c1_i32 : i32
    %1 = arith.addi %0, %arg2 : i32
    %c0_i32 = arith.constant 0 : i32
    %c0_i32_0 = arith.constant 0 : i32
    return %arg1, %c0_i32, %1 : i32, i32, i32
  }
  func.func @transform_1(%arg0: i32, %arg1: i32, %arg2: i32) -> (i32, i32, i32) {
    %c1_i32 = arith.constant 1 : i32
    %0 = arith.muli %arg0, %c1_i32 : i32
    %1 = arith.addi %0, %arg2 : i32
    %c0_i32 = arith.constant 0 : i32
    %c0_i32_0 = arith.constant 0 : i32
    return %arg1, %c0_i32, %1 : i32, i32, i32
  }
  func.func @transform_2(%arg0: i32, %arg1: i32, %arg2: i32) -> (i32, i32, i32) {
    %c0_i32 = arith.constant 0 : i32
    %c0_i32_0 = arith.constant 0 : i32
    %c0_i32_1 = arith.constant 0 : i32
    return %arg0, %c0_i32, %c0_i32_0 : i32, i32, i32
  }
}

module attributes {stable_mosaic.version = 11 : i64} {
  func.func @_ce_kernel(%arg0: i32, %arg1: i32, %arg2: i32, %arg3: memref<1x4x256xf32, #tpu.memory_space<vmem>>, %arg4: memref<1x1x256xi32, #tpu.memory_space<vmem>>, %arg5: memref<1x1x256xf32, #tpu.memory_space<vmem>>) attributes {dimension_semantics = [#tpu.dimension_semantics<parallel>, #tpu.dimension_semantics<arbitrary>, #tpu.dimension_semantics<arbitrary>], iteration_bounds = array<i64: 1, 2, 1>, scalar_prefetch = 0 : i64, scratch_operands = 0 : i64, tpu.core_type = #tpu.core_type<tc>, window_params = [{transform_indices = @transform_0, window_bounds = array<i64: 1, 4, 256>}, {transform_indices = @transform_1, window_bounds = array<i64: 1, 1, 256>}, {transform_indices = @transform_2, window_bounds = array<i64: 1, 1, 256>}]} {
    %c0_i32 = arith.constant 0 : i32
    %0 = arith.cmpi eq, %arg1, %c0_i32 : i32
    %c0_i32_0 = arith.constant 0 : i32
    %1 = arith.cmpi eq, %arg2, %c0_i32_0 : i32
    %2 = arith.andi %0, %1 : i1
    %3 = arith.extui %2 : i1 to i32
    %c0_i32_1 = arith.constant 0 : i32
    %4 = arith.cmpi ne, %3, %c0_i32_1 : i32
    scf.if %4 {
      %cst_15 = arith.constant 0.000000e+00 : f32
      %44 = vector.broadcast %cst_15 : f32 to vector<1x1x256xf32>
      %c0_16 = arith.constant 0 : index
      %c0_17 = arith.constant 0 : index
      %c0_18 = arith.constant 0 : index
      %45 = vector.load %arg5[%c0_16, %c0_17, %c0_18] : memref<1x1x256xf32, #tpu.memory_space<vmem>>, vector<1x1x256xf32>
      tpu.vector_store %arg5[%c0_16, %c0_17, %c0_18], %44 {strides = array<i32>} : memref<1x1x256xf32, #tpu.memory_space<vmem>>, vector<1x1x256xf32>,
    } else {
    }
    %c0_i32_2 = arith.constant 0 : i32
    %c1_i32 = arith.constant 1 : i32
    %5 = arith.muli %c0_i32_2, %c1_i32 : i32
    %c0_i32_3 = arith.constant 0 : i32
    %6 = arith.addi %c0_i32_3, %5 : i32
    %c256_i32 = arith.constant 256 : i32
    %7 = arith.muli %6, %c256_i32 : i32
    %8 = tpu.assume_multiple %7, 128 : i32
    %c0 = arith.constant 0 : index
    %c0_4 = arith.constant 0 : index
    %9 = arith.index_cast %8 : i32 to index
    %10 = vector.load %arg3[%c0, %c0_4, %9] : memref<1x4x256xf32, #tpu.memory_space<vmem>>, vector<1x4x256xf32>
    %11 = vector.shape_cast %10 : vector<1x4x256xf32> to vector<4x256xf32>
    %c0_5 = arith.constant 0 : index
    %c0_6 = arith.constant 0 : index
    %12 = arith.index_cast %8 : i32 to index
    %13 = vector.load %arg4[%c0_5, %c0_6, %12] : memref<1x1x256xi32, #tpu.memory_space<vmem>>, vector<1x1x256xi32>
    %14 = vector.shape_cast %13 : vector<1x1x256xi32> to vector<1x256xi32>
    %cst = arith.constant dense<0xFF800000> : vector<256xf32>
    %15 = vector.multi_reduction <maximumf>, %11, %cst [0] : vector<4x256xf32> to vector<256xf32>
    %16 = vector.shape_cast %15 : vector<256xf32> to vector<1x256xf32>
    %17 = vector.broadcast %16 : vector<1x256xf32> to vector<4x256xf32>
    %18 = arith.subf %11, %17 : vector<4x256xf32>
    %19 = math.exp %18 : vector<4x256xf32>
    %cst_7 = arith.constant dense<0.000000e+00> : vector<256xf32>
    %20 = vector.multi_reduction <add>, %19, %cst_7 [0] : vector<4x256xf32> to vector<256xf32>
    %21 = vector.shape_cast %20 : vector<256xf32> to vector<1x256xf32>
    %22 = math.log %21 : vector<1x256xf32>
    %23 = tpu.iota {dimensions = array<i32: 0>} : vector<4x256xi32>
    %24 = vector.broadcast %14 : vector<1x256xi32> to vector<4x256xi32>
    %25 = arith.cmpi eq, %23, %24 : vector<4x256xi32>
    %cst_8 = arith.constant 0.000000e+00 : f32
    %26 = vector.broadcast %cst_8 : f32 to vector<4x256xf32>
    %27 = arith.select %25, %18, %26 : vector<4x256xi1>, vector<4x256xf32>
    %cst_9 = arith.constant dense<0.000000e+00> : vector<256xf32>
    %28 = vector.multi_reduction <add>, %27, %cst_9 [0] : vector<4x256xf32> to vector<256xf32>
    %29 = vector.shape_cast %28 : vector<256xf32> to vector<1x256xf32>
    %c-100_i32 = arith.constant -100 : i32
    %30 = vector.broadcast %c-100_i32 : i32 to vector<1x256xi32>
    %31 = arith.cmpi ne, %14, %30 : vector<1x256xi32>
    %32 = arith.extui %31 : vector<1x256xi1> to vector<1x256xi32>
    %33 = arith.sitofp %32 : vector<1x256xi32> to vector<1x256xf32>
    %34 = arith.subf %22, %29 : vector<1x256xf32>
    %35 = arith.mulf %34, %33 : vector<1x256xf32>
    %c0_10 = arith.constant 0 : index
    %c0_11 = arith.constant 0 : index
    %36 = arith.index_cast %8 : i32 to index
    %37 = vector.load %arg5[%c0_10, %c0_11, %36] : memref<1x1x256xf32, #tpu.memory_space<vmem>>, vector<1x1x256xf32>
    %38 = vector.shape_cast %37 : vector<1x1x256xf32> to vector<1x256xf32>
    %39 = arith.addf %38, %35 : vector<1x256xf32>
    %c0_12 = arith.constant 0 : index
    %c0_13 = arith.constant 0 : index
    %40 = arith.index_cast %8 : i32 to index
    %41 = vector.load %arg5[%c0_12, %c0_13, %40] : memref<1x1x256xf32, #tpu.memory_space<vmem>>, vector<1x1x256xf32>
    %42 = vector.shape_cast %41 : vector<1x1x256xf32> to vector<1x256xf32>
    %43 = vector.shape_cast %39 : vector<1x256xf32> to vector<1x1x256xf32>
    tpu.vector_store %arg5[%c0_12, %c0_13, %40], %43 {strides = array<i32>} : memref<1x1x256xf32, #tpu.memory_space<vmem>>, vector<1x1x256xf32>,
    %c1_i32_14 = arith.constant 1 : i32
    return
  }
  func.func @transform_0(%arg0: i32, %arg1: i32, %arg2: i32) -> (i32, i32, i32) {
    %c1_i32 = arith.constant 1 : i32
    %0 = arith.muli %arg0, %c1_i32 : i32
    %1 = arith.addi %0, %arg2 : i32
    %c0_i32 = arith.constant 0 : i32
    %c0_i32_0 = arith.constant 0 : i32
    return %arg1, %c0_i32, %1 : i32, i32, i32
  }
  func.func @transform_1(%arg0: i32, %arg1: i32, %arg2: i32) -> (i32, i32, i32) {
    %c1_i32 = arith.constant 1 : i32
    %0 = arith.muli %arg0, %c1_i32 : i32
    %1 = arith.addi %0, %arg2 : i32
    %c0_i32 = arith.constant 0 : i32
    %c0_i32_0 = arith.constant 0 : i32
    return %arg1, %c0_i32, %1 : i32, i32, i32
  }
  func.func @transform_2(%arg0: i32, %arg1: i32, %arg2: i32) -> (i32, i32, i32) {
    %c0_i32 = arith.constant 0 : i32
    %c0_i32_0 = arith.constant 0 : i32
    %c0_i32_1 = arith.constant 0 : i32
    return %arg0, %c0_i32, %c0_i32_0 : i32, i32, i32
  }
}

</mosaic_0001>

<bundles_post_ra>
// kernel: tpu_custom_call.1
= control target key start
LH: loop header
LB: loop body
LE: loop exit
PB: predicated region body
PF: predicated region fallthrough
CT: control target
= control target key end

     0   :  { %7 = vsyncpa [#allocation3], 0  ;;  %s947_s0 = inlined_call_operand.hbm [shape: f32[2,4,256], index: 0, kind: input, shape index: {}]   ;;  %s948_s1 = inlined_call_operand.hbm [shape: s8[2,1,256], index: 1, kind: input, shape index: {}]   ;;  %s949_s2 = inlined_call_operand.hbm [shape: f32[1,1,256], index: 2, kind: output, shape index: {}]  }
   0x1   :  { %9 = vsyncpa [#allocation3 + $0x1], 0 }
   0x2   :  { %10 = vsyncpa [#allocation6], 0 }
   0x3   :  { %12 = vsyncpa [#allocation6 + $0x1], 0 }
   0x4   :  { %13 = vsyncpa [#allocation4], 0  ;;  %s740_s9 = smov 0   ;;  %s742_s10 = smov 0  }
   0x5   :  { %s744_s11 = smov 0   ;;  %s746_s12 = smov 0  }
   0x6   :  { %s748_s13 = smov 0   ;;  %s750_s14 = smov 0  }
   0x7 LB: > { %s475_s15 = sadd.s32 4294967295, %s717_s14   ;;  %s34_s16 = sadd.s32 1, %s713_s13  ;;  %s717_s14 = sphi %s750_s14, %s19_s14   ;;  %s713_s13 = sphi %s748_s13, %s964_s13   ;;  %s709_s12 = sphi %s746_s12, %s963_s12   ;;  %s705_s11 = sphi %s744_s11, %s962_s11   ;;  %s701_s10 = sphi %s742_s10, %s961_s10   ;;  %s697_s9 = sphi %s740_s9, %s960_s9  }
   0x8   : > { %p36_p0 = scmp.ge.s32.totalorder %s34_s16, 2  ;;  %s49_s17 = sadd.s32 1, %s705_s11 }
   0x9   : > { %p56_p1 = scmp.ne.s32.totalorder %s705_s11, %s701_s10  ;;  %p57_p2 = scmp.eq.s32.totalorder %s717_s14, 0 }
   0xa   : > { %s966_s16 = smov (%p36_p0, %s34_s16), 0  ;;  %p62_p4 = scmp.ne.s32.totalorder %s701_s10, %s697_s9 }
   0xb   : > { %p776_p3 = por %p57_p2, %p56_p1  ;;  %s44_s19 = ssub.s32 %s713_s13, %s966_s16 }
   0xc   : > { %p63_p5 = scmp.eq.s32.totalorder %s475_s15, 0  ;;  %p47_p6 = scmp.eq.s32.totalorder %s44_s19, 0 }
   0xd   : > { %p511_p8 = scmp.lt.s32.totalorder %s717_s14, 2  ;;  %s794_s22 = sand.u32 1, %s705_s11  }
   0xe   : > { %p785_p7 = por %p63_p5, %p62_p4  ;;  %s493_s23 = sshll.u32 %s713_s13, 7 }
   0xf   : > { %s791_s21 = scalar_select %p47_p6, %s705_s11, %s49_s17  }
  0x10   : > { %s952_s20 = scalar_select %p785_p7, 1, 0 }
  0x11   : > { %s478_s24 = sshll.u32 %s794_s22, 3  ;;  %s801_s27 = scalar_lea.hbm %s947_s0, %s493_s23 }
  0x12   : > { %s146_s28 = scalar_lea.vmem [#allocation2], %s478_s24  ;;  %p805_p9 = pnand %p511_p8, %p776_p3 }
  0x13   : > { %s157_s29 = sshll.u32 %s146_s28, 4  ;;  %s143_s3 = scalar_lea.sflag [#allocation3], %s794_s22  ;;  %s809_s29 = int_to_ptr.vmem [resolvable:$true] %s157_s29 }
  0x14   : > { %s573_s4 = scalar_lea.hbm %s801_s27, 128  ;;  %p575_p13 = pneg %p805_p9 }
  0x15   : > { %p574_p12 = scmp.ne.s32.totalorder %s801_s27, %s573_s4  ;;  %s578_s7 = scalar_lea.hbm %s947_s0, 256 }
  0x16   : > { %p579_p2 = scmp.lt.u32.totalorder %s801_s27, %s947_s0  ;;  %p580_p3 = scmp.lt.u32.totalorder %s578_s7, %s573_s4 }
  0x17   : > { %p576_p0 = pnand %p575_p13, %p574_p12  ;;  %p582_p5 = scmp.lt.u32.totalorder %s573_s4, %s801_s27 }
  0x18   : > { %p581_p4 = por %p580_p3, %p579_p2 }
  0x19   : > { %p577_p1 = pneg %p576_p0 }
  0x1a   : > { %p583_p6 = por %p582_p5, %p581_p4 }
  0x1c   : > { %p584_p8 = pnand %p583_p6, %p577_p1 }
  0x1e   : > { %587 = shalt.err (!%p584_p8)
}
  0x1f   : > { %s588_s17 = scalar_lea.vmem %s809_s29, 128  ;;  %s719_s18 = smov [#allocation2]  }
  0x20   : > { %p589_p12 = scmp.ne.s32.totalorder %s809_s29, %s588_s17  ;;  %s593_s19 = sshll.u32 %s719_s18, 4  ;;  %s594_s19 = int_to_ptr.vmem [resolvable:$false] %s593_s19 }
  0x21   : > { %s595_s23 = scalar_lea.vmem %s594_s19, 256  ;;  %p596_p11 = scmp.lt.s32.totalorder %s809_s29, %s594_s19 }
  0x22   : > { %p591_p0 = pnand %p589_p12, %p575_p13  ;;  %p597_p2 = scmp.lt.s32.totalorder %s595_s23, %s588_s17 }
  0x24   : > { %p592_p10 = pneg %p591_p0  ;;  %p598_p3 = por %p597_p2, %p596_p11 }
  0x26   : > { %p599_p4 = pnand %p598_p3, %p592_p10 }
  0x28   : > { %602 = shalt.err (!%p599_p4)
}
  0x29   : > { %507 = dma.hbm_to_vmem [thread:$0]  (!%p805_p9), %s801_s27, 128, %s809_s29, %s143_s3  }
  0x2a   : > { %p954_p1 = scmp.lt.s32.totalorder %s717_s14, 3  ;;  %p955_p5 = scmp.ge.s32.totalorder %s717_s14, 1 }
  0x2b   : > { %s481_s25 = sshll.u32 %s794_s22, 1  ;;  %s494_s26 = sshll.u32 %s713_s13, 5 }
  0x2c   : > { %p843_p6 = pnand %p955_p5, %p954_p1  ;;  %s852_s5 = scalar_lea.hbm %s948_s1, %s494_s26 }
  0x2d   : > { %s168_s6 = scalar_lea.vmem [#allocation5], %s481_s25  ;;  %s165_s27 = scalar_lea.sflag [#allocation6], %s794_s22 }
  0x2e   : > { %s956_s24 = scalar_select %p843_p6, 1, 0 }
  0x2f   : > { %s179_s7 = sshll.u32 %s168_s6, 4  ;;  %s603_s29 = scalar_lea.hbm %s852_s5, 32  ;;  %s180_s7 = int_to_ptr.vmem [resolvable:$true] %s179_s7 }
  0x30   : > { %p604_p10 = scmp.ne.s32.totalorder %s852_s5, %s603_s29  ;;  %s608_s9 = scalar_lea.hbm %s948_s1, 64 }
  0x31   : > { %p609_p12 = scmp.lt.u32.totalorder %s852_s5, %s948_s1  ;;  %p610_p0 = scmp.lt.u32.totalorder %s608_s9, %s603_s29 }
  0x32   : > { %p606_p11 = pnand %p604_p10, %p575_p13  ;;  %p612_p3 = scmp.lt.u32.totalorder %s603_s29, %s852_s5 }
  0x33   : > { %p611_p2 = por %p610_p0, %p609_p12 }
  0x34   : > { %p607_p8 = pneg %p606_p11 }
  0x35   : > { %p613_p4 = por %p612_p3, %p611_p2 }
  0x37   : > { %p614_p1 = pnand %p613_p4, %p607_p8 }
  0x39   : > { %617 = shalt.err (!%p614_p1)
}
  0x3a   : > { %s618_s22 = scalar_lea.vmem %s180_s7, 32  ;;  %s720_s19 = smov [#allocation5]  }
  0x3b   : > { %p619_p5 = scmp.ne.s32.totalorder %s180_s7, %s618_s22  ;;  %s623_s23 = sshll.u32 %s720_s19, 4  ;;  %s624_s23 = int_to_ptr.vmem [resolvable:$false] %s623_s23 }
  0x3c   : > { %s625_s25 = scalar_lea.vmem %s624_s23, 64  ;;  %p626_p7 = scmp.lt.s32.totalorder %s180_s7, %s624_s23 }
  0x3d   : > { %p621_p10 = pnand %p619_p5, %p575_p13  ;;  %p627_p6 = scmp.lt.s32.totalorder %s625_s25, %s618_s22 }
  0x3f   : > { %p622_p11 = pneg %p621_p10  ;;  %p628_p0 = por %p627_p6, %p626_p7 }
  0x41   : > { %p629_p12 = pnand %p628_p0, %p622_p11 }
  0x43   : > { %632 = shalt.err (!%p629_p12)
}
  0x44   : > { %510 = dma.hbm_to_vmem [thread:$0]  (!%p805_p9), %s852_s5, 32, %s180_s7, %s165_s27  }
  0x45   : > { %p957_p8 = scmp.ne.s32.totalorder %s956_s24, 0 }
  0x46   : > { %s190_s26 = sand.u32 (!%p957_p8), 1, %s701_s10   ;;  %p958_p13 = scmp.ne.s32.totalorder (!%p957_p8), %s952_s20, 0 }
  0x47   : > { %188 = sbr.rel (%p957_p8) target bundleno = 179 (0xb3), region = 28  ;;  %s485_s28 = sshll.u32 (!%p957_p8), %s190_s26, 3 }
  0x48   : > { %s191_s4 = scalar_lea.sflag (!%p957_p8), [#allocation3], %s190_s26  ;;  %s194_s6 = scalar_lea.vmem (!%p957_p8), [#allocation2], %s485_s28 }
  0x4e   : > { %684 = dma.done.wait (%p958_p13), %s191_s4, 128  }
  0x4f   : > { %686 = vsyncadd (%p958_p13), %s191_s4, 4294967168  ;;  %s486_s29 = sshll.u32 %s190_s26, 1  ;;  %s200_s3 = scalar_lea.sflag [#allocation6], %s190_s26 }
  0x50   : > { %s203_s30 = scalar_lea.vmem [#allocation5], %s486_s29 }
  0x51   : > { %688 = dma.done.wait (%p958_p13), %s200_s3, 32  }
  0x52   : > { %690 = vsyncadd (%p958_p13), %s200_s3, 4294967264  ;;  %p228_p7 = scmp.eq.s32.totalorder %s709_s12, 0 }
  0x53   : > { %v234_v0 = vlaneseq (%p228_p7)  ;;  %v721_v1 = vmov (%p228_p7), 0.0  }
  0x54   : > { %233 = sbr.rel (!%p228_p7) target bundleno = 91 (0x5b), region = 40 }
  0x55   : > { %vm236_vm0 = vcmp.lt.s32.totalorder (%p228_p7), %v234_v0, 256 }
  0x56   : > { %238 = vst.msk [vmem:[#allocation7] sm:$0x3] (%p228_p7), %vm236_vm0, %v721_v1 }
  0x5b PF: > { %v239_v2 = vld [vmem:[%s194_s6] sm:$0xff]  ;;  %vm245_vm1 = vcmask 1043456   ;;  %v288_v11 = vlaneseq  ;;  %v240_v17 = vld [vmem:[%s203_s30] sm:$0x3]  ;;  %v722_v62 = vmov 0.0   ;;  %s724_s12 = smov [#allocation7]  }
  0x5c   : > { %v243_v3 = vcombine.high %v239_v2, %v239_v2  ;;  %v246_v4 = vsel %vm245_vm1, %v239_v2, -inf  ;;  %v241_v20 = vunpack.c.0.s8 %v240_v17  ;;  %v723_v1 = vmov 1966171168   ;;  %s380_s20 = sshll.u32 %s724_s12, 4  ;;  %p903_p9 = scmp.eq.s32.totalorder %s475_s15, 1  ;;  %s381_s20 = int_to_ptr.vmem [resolvable:$true] %s380_s20 }
  0x5d   : > { %v247_v5 = vrot.slane %v246_v4, 4  ;;  %v889_v16 = vshrl.u32 %v288_v11, 7  ;;  %vm367_vm5 = vcmp.lt.s32.totalorder %v288_v11, 256  ;;  %s633_s5 = scalar_lea.vmem %s381_s20, 32  ;;  %p640_p4 = scmp.lt.s32.totalorder %s381_s20, %s381_s20 }
  0x5e   : > { %v253_v6 = vsel %vm245_vm1, %v243_v3, -inf  ;;  %vm327_vm4 = vcmp.ne.s32.totalorder %v241_v20, 4294967196  ;;  %p634_p6 = scmp.ne.s32.totalorder %s381_s20, %s633_s5  ;;  %p641_p1 = scmp.lt.s32.totalorder %s633_s5, %s633_s5 }
  0x5f   : > { %v248_v7 = vmax.f32 %v246_v4, %v247_v5  ;;  %v254_v8 = vrot.slane %v253_v6, 4  ;;  %v292_v22 = vsub.s32 0, %v889_v16  ;;  %v296_v24 = vsub.s32 4, %v889_v16 }
  0x60   : > { %v488_v63 = vsel %vm327_vm4, 1.0, %v722_v62  ;;  %p635_p2 = pnand %p634_p6, %p903_p9  ;;  %p642_p5 = por %p641_p1, %p640_p4 }
  0x61   : > { %v249_v9 = vrot.slane %v248_v7, 2  ;;  %v255_v10 = vmax.f32 %v253_v6, %v254_v8  ;;  %v293_v26 = vrot.slane %v241_v20, %v292_v22  ;;  %v297_v28 = vrot.slane %v241_v20, %v296_v24  ;;  %v345_v20 = vld [vmem:[#allocation7] sm:$0x3] }
  0x62   : > { %v336_v6 = vrot.slane %v488_v63, %v292_v22  ;;  %p636_p3 = pneg %p635_p2 }
  0x63   : > { %v250_v12 = vmax.f32 %v248_v7, %v249_v9  ;;  %v256_v13 = vrot.slane %v255_v10, 2  ;;  %v301_v29 = vrot.slane %v293_v26, %v292_v22  ;;  %v305_v30 = vrot.slane %v297_v28, %v292_v22 }
  0x64   : > { %p643_p10 = pnand %p642_p5, %p636_p3 }
  0x65   : > { %v251_v14 = vrot.slane %v250_v12, 1  ;;  %v257_v15 = vmax.f32 %v255_v10, %v256_v13  ;;  %vm306_vm2 = vcmp.eq.s32.totalorder %v889_v16, %v301_v29  ;;  %vm307_vm3 = vcmp.eq.s32.totalorder %v889_v16, %v305_v30 }
  0x66   : > { %v340_v10 = vrot.slane %v488_v63, %v296_v24 }
  0x67   : > { %v252_v18 = vmax.f32 %v250_v12, %v251_v14  ;;  %v258_v19 = vrot.slane %v257_v15, 1 }
  0x69   : > { %v259_v21 = vmax.f32 %v257_v15, %v258_v19 }
  0x6b   : > { %v262_v23 = vcombine.low %v252_v18, %v259_v21 }
  0x6d   : > { %v264_v25 = vsub.f32 %v239_v2, %v262_v23  ;;  %v350_v2 = vunpack.c.l.s4 %v723_v1 }
  0x6f   : > { %v265_v27 = vmul.f32 1.442695, %v264_v25  ;;  %v309_v31 = vcombine.high %v264_v25, %v264_v25  ;;  %v311_v32 = vsel %vm306_vm2, %v264_v25, 0.0  ;;  %v351_v12 = vunpack.c.0.s8 %v350_v2 }
  0x70   : > { %v313_v35 = vsel %vm245_vm1, %v311_v32, 0.0 }
  0x71   : > { %567 = vpow2.f32 %v265_v27  ;;  %v312_v33 = vsel %vm307_vm3, %v309_v31, 0.0  ;;  %v314_v41 = vrot.slane %v313_v35, 4  ;;  %v354_v17 = vsub.s32 %v351_v12, %v889_v16 }
  0x72   : > { %v320_v39 = vsel %vm245_vm1, %v312_v33, 0.0 }
  0x73   : > { %v321_v44 = vrot.slane %v320_v39, 4  ;;  %v315_v47 = vadd.f32 %v314_v41, %v313_v35 }
  0x75   : > { %v322_v50 = vadd.f32 %v321_v44, %v320_v39  ;;  %v316_v53 = vrot.slane %v315_v47, 2 }
  0x77   : > { %v323_v56 = vrot.slane %v322_v50, 2  ;;  %v317_v58 = vadd.f32 %v316_v53, %v315_v47 }
  0x79   : > { %v324_v59 = vadd.f32 %v323_v56, %v322_v50  ;;  %v318_v60 = vrot.slane %v317_v58, 1 }
  0x7b   : > { %v568_v34 = vpop.eup %567  ;;  %v325_v61 = vrot.slane %v324_v59, 1  ;;  %v319_v0 = vadd.f32 %v318_v60, %v317_v58 }
  0x7c   : > { %v268_v36 = vcombine.high %v568_v34, %v568_v34  ;;  %v270_v37 = vsel %vm245_vm1, %v568_v34, 0.0 }
  0x7d   : > { %v271_v38 = vrot.slane %v270_v37, 4  ;;  %v326_v5 = vadd.f32 %v325_v61, %v324_v59 }
  0x7e   : > { %v277_v40 = vsel %vm245_vm1, %v268_v36, 0.0 }
  0x7f   : > { %v272_v42 = vadd.f32 %v271_v38, %v270_v37  ;;  %v278_v43 = vrot.slane %v277_v40, 4 }
  0x81   : > { %v273_v45 = vrot.slane %v272_v42, 2  ;;  %v279_v46 = vadd.f32 %v278_v43, %v277_v40 }
  0x83   : > { %v274_v48 = vadd.f32 %v273_v45, %v272_v42  ;;  %v280_v49 = vrot.slane %v279_v46, 2 }
  0x85   : > { %v275_v51 = vrot.slane %v274_v48, 1  ;;  %v281_v52 = vadd.f32 %v280_v49, %v279_v46 }
  0x87   : > { %v276_v54 = vadd.f32 %v275_v51, %v274_v48  ;;  %v282_v55 = vrot.slane %v281_v52, 1 }
  0x89   : > { %v283_v57 = vadd.f32 %v282_v55, %v281_v52  ;;  %569 = vlog2.f32 %v276_v54 }
  0x8b   : > { %571 = vlog2.f32 %v283_v57 }
  0x93   : > { %v570_v3 = vpop.eup %569 }
  0x94   : > { %v285_v4 = vmul.f32 0.6931472, %v570_v3 }
  0x95   : > { %v572_v7 = vpop.eup %571 }
  0x96   : > { %v287_v8 = vmul.f32 0.6931472, %v572_v7  ;;  %v330_v9 = vsub.f32 %v285_v4, %v319_v0 }
  0x98   : > { %v331_v13 = vsub.f32 %v287_v8, %v326_v5  ;;  %v343_v14 = vmul.f32 %v336_v6, %v330_v9 }
  0x9a   : > { %v344_v15 = vmul.f32 %v340_v10, %v331_v13 }
  0x9c   : > { %v348_v18 = vcombine.low %v343_v14, %v344_v15 }
  0x9e   : > { %v355_v19 = vrot.slane %v348_v18, %v354_v17 }
  0xa0   : > { %v362_v21 = vrot.slane %v355_v19, %v354_v17 }
  0xa2   : > { %v364_v22 = vadd.f32 %v362_v21, %v345_v20 }
  0xa4   : > { %369 = vst.msk [vmem:[#allocation7] sm:$0x3] %vm367_vm5, %v364_v22 }
  0xa5   : > { %646 = shalt.err (!%p643_p10)
}
  0xa6   : > { %s647_s15 = scalar_lea.hbm %s949_s2, 32 }
  0xa7   : > { %p648_p11 = scmp.ne.s32.totalorder %s949_s2, %s647_s15  ;;  %p653_p8 = scmp.lt.u32.totalorder %s647_s15, %s949_s2 }
  0xa9   : > { %p649_p0 = pnand %p648_p11, %p903_p9 }
  0xab   : > { %p650_p12 = pneg %p649_p0 }
  0xad   : > { %p655_p13 = pnand %p653_p8, %p650_p12 }
  0xaf   : > { %658 = shalt.err (!%p655_p13)
}
  0xb0   : > { %501 = dma.vmem_to_hbm [thread:$0]  (%p903_p9), %s381_s20, 32, %s949_s2, [#allocation4]  }
  0xb1   : > { %692 = dma.done.wait (%p903_p9), [#allocation4], 32  }
  0xb2   : > { %694 = vsyncadd (%p903_p9), [#allocation4], 4294967264 }
  0xb3 PF: > { %s19_s14 = sadd.s32 1, %s717_s14   ;;  %s960_s9 = smov %s701_s10 }
  0xb4   : > { %p16_p7 = scmp.ge.s32.totalorder %s19_s14, 4   ;;  %s961_s10 = smov %s705_s11 }
  0xb5   : > { %s962_s11 = smov %s791_s21  ;;  %s963_s12 = smov %s713_s13 }
  0xb6   : > { %s964_s13 = smov %s966_s16  ;;  %18 = sbr.rel (!%p16_p7) target bundleno = 7 (0x7), region = 83 }
  0xbd   :  { %393 = vsyncpa [#allocation3], 1 }
  0xbe   :  { %395 = vsyncpa [#allocation3 + $0x1], 1 }
  0xbf   :  { %396 = vsyncpa [#allocation6], 1 }
  0xc0   :  { %398 = vsyncpa [#allocation6 + $0x1], 1 }
  0xc1   :  { %399 = vsyncpa [#allocation4], 1 }
  0xc2   :  { %401 = vsyncpa [#allocation4 + $0x1], 1 }

// kernel: tpu_custom_call.1
= control target key start
LH: loop header
LB: loop body
LE: loop exit
PB: predicated region body
PF: predicated region fallthrough
CT: control target
= control target key end

     0   :  { %7 = vsyncpa [#allocation3], 0  ;;  %s941_s0 = inlined_call_operand.hbm [shape: f32[2,4,256], index: 0, kind: input, shape index: {}]   ;;  %s942_s1 = inlined_call_operand.hbm [shape: s32[2,1,256], index: 1, kind: input, shape index: {}]   ;;  %s943_s2 = inlined_call_operand.hbm [shape: f32[1,1,256], index: 2, kind: output, shape index: {}]  }
   0x1   :  { %9 = vsyncpa [#allocation3 + $0x1], 0 }
   0x2   :  { %10 = vsyncpa [#allocation6], 0 }
   0x3   :  { %12 = vsyncpa [#allocation6 + $0x1], 0 }
   0x4   :  { %13 = vsyncpa [#allocation4], 0  ;;  %s731_s9 = smov 0   ;;  %s733_s10 = smov 0  }
   0x5   :  { %s735_s11 = smov 0   ;;  %s737_s12 = smov 0  }
   0x6   :  { %s739_s13 = smov 0   ;;  %s741_s14 = smov 0  }
   0x7 LB: > { %s466_s15 = sadd.s32 4294967295, %s708_s14   ;;  %s34_s16 = sadd.s32 1, %s704_s13  ;;  %s708_s14 = sphi %s741_s14, %s19_s14   ;;  %s704_s13 = sphi %s739_s13, %s958_s13   ;;  %s700_s12 = sphi %s737_s12, %s957_s12   ;;  %s696_s11 = sphi %s735_s11, %s956_s11   ;;  %s692_s10 = sphi %s733_s10, %s955_s10   ;;  %s688_s9 = sphi %s731_s9, %s954_s9  }
   0x8   : > { %p36_p0 = scmp.ge.s32.totalorder %s34_s16, 2  ;;  %s49_s17 = sadd.s32 1, %s696_s11 }
   0x9   : > { %p56_p1 = scmp.ne.s32.totalorder %s696_s11, %s692_s10  ;;  %p57_p2 = scmp.eq.s32.totalorder %s708_s14, 0 }
   0xa   : > { %s960_s16 = smov (%p36_p0, %s34_s16), 0  ;;  %p62_p4 = scmp.ne.s32.totalorder %s692_s10, %s688_s9 }
   0xb   : > { %p767_p3 = por %p57_p2, %p56_p1  ;;  %s44_s19 = ssub.s32 %s704_s13, %s960_s16 }
   0xc   : > { %p63_p5 = scmp.eq.s32.totalorder %s466_s15, 0  ;;  %p47_p6 = scmp.eq.s32.totalorder %s44_s19, 0 }
   0xd   : > { %p502_p8 = scmp.lt.s32.totalorder %s708_s14, 2  ;;  %s785_s22 = sand.u32 1, %s696_s11  }
   0xe   : > { %p776_p7 = por %p63_p5, %p62_p4  ;;  %s484_s23 = sshll.u32 %s704_s13, 7 }
   0xf   : > { %s782_s21 = scalar_select %p47_p6, %s696_s11, %s49_s17  }
  0x10   : > { %s946_s20 = scalar_select %p776_p7, 1, 0 }
  0x11   : > { %s469_s24 = sshll.u32 %s785_s22, 3  ;;  %s792_s27 = scalar_lea.hbm %s941_s0, %s484_s23 }
  0x12   : > { %s146_s28 = scalar_lea.vmem [#allocation2], %s469_s24  ;;  %p796_p9 = pnand %p502_p8, %p767_p3 }
  0x13   : > { %s157_s29 = sshll.u32 %s146_s28, 4  ;;  %s143_s3 = scalar_lea.sflag [#allocation3], %s785_s22  ;;  %s800_s29 = int_to_ptr.vmem [resolvable:$true] %s157_s29 }
  0x14   : > { %s564_s4 = scalar_lea.hbm %s792_s27, 128  ;;  %p566_p13 = pneg %p796_p9 }
  0x15   : > { %p565_p12 = scmp.ne.s32.totalorder %s792_s27, %s564_s4  ;;  %s569_s7 = scalar_lea.hbm %s941_s0, 256 }
  0x16   : > { %p570_p2 = scmp.lt.u32.totalorder %s792_s27, %s941_s0  ;;  %p571_p3 = scmp.lt.u32.totalorder %s569_s7, %s564_s4 }
  0x17   : > { %p567_p0 = pnand %p566_p13, %p565_p12  ;;  %p573_p5 = scmp.lt.u32.totalorder %s564_s4, %s792_s27 }
  0x18   : > { %p572_p4 = por %p571_p3, %p570_p2 }
  0x19   : > { %p568_p1 = pneg %p567_p0 }
  0x1a   : > { %p574_p6 = por %p573_p5, %p572_p4 }
  0x1c   : > { %p575_p8 = pnand %p574_p6, %p568_p1 }
  0x1e   : > { %578 = shalt.err (!%p575_p8)
}
  0x1f   : > { %s579_s17 = scalar_lea.vmem %s800_s29, 128  ;;  %s710_s18 = smov [#allocation2]  }
  0x20   : > { %p580_p12 = scmp.ne.s32.totalorder %s800_s29, %s579_s17  ;;  %s584_s19 = sshll.u32 %s710_s18, 4  ;;  %s585_s19 = int_to_ptr.vmem [resolvable:$false] %s584_s19 }
  0x21   : > { %s586_s23 = scalar_lea.vmem %s585_s19, 256  ;;  %p587_p11 = scmp.lt.s32.totalorder %s800_s29, %s585_s19 }
  0x22   : > { %p582_p0 = pnand %p580_p12, %p566_p13  ;;  %p588_p2 = scmp.lt.s32.totalorder %s586_s23, %s579_s17 }
  0x24   : > { %p583_p10 = pneg %p582_p0  ;;  %p589_p3 = por %p588_p2, %p587_p11 }
  0x26   : > { %p590_p4 = pnand %p589_p3, %p583_p10 }
  0x28   : > { %593 = shalt.err (!%p590_p4)
}
  0x29   : > { %498 = dma.hbm_to_vmem [thread:$0]  (!%p796_p9), %s792_s27, 128, %s800_s29, %s143_s3  }
  0x2a   : > { %p948_p1 = scmp.lt.s32.totalorder %s708_s14, 3  ;;  %p949_p5 = scmp.ge.s32.totalorder %s708_s14, 1 }
  0x2b   : > { %s472_s25 = sshll.u32 %s785_s22, 1  ;;  %s485_s26 = sshll.u32 %s704_s13, 5 }
  0x2c   : > { %p834_p6 = pnand %p949_p5, %p948_p1  ;;  %s843_s5 = scalar_lea.hbm %s942_s1, %s485_s26 }
  0x2d   : > { %s168_s6 = scalar_lea.vmem [#allocation5], %s472_s25  ;;  %s165_s27 = scalar_lea.sflag [#allocation6], %s785_s22 }
  0x2e   : > { %s950_s24 = scalar_select %p834_p6, 1, 0 }
  0x2f   : > { %s179_s7 = sshll.u32 %s168_s6, 4  ;;  %s594_s29 = scalar_lea.hbm %s843_s5, 32  ;;  %s180_s7 = int_to_ptr.vmem [resolvable:$true] %s179_s7 }
  0x30   : > { %p595_p10 = scmp.ne.s32.totalorder %s843_s5, %s594_s29  ;;  %s599_s9 = scalar_lea.hbm %s942_s1, 64 }
  0x31   : > { %p600_p12 = scmp.lt.u32.totalorder %s843_s5, %s942_s1  ;;  %p601_p0 = scmp.lt.u32.totalorder %s599_s9, %s594_s29 }
  0x32   : > { %p597_p11 = pnand %p595_p10, %p566_p13  ;;  %p603_p3 = scmp.lt.u32.totalorder %s594_s29, %s843_s5 }
  0x33   : > { %p602_p2 = por %p601_p0, %p600_p12 }
  0x34   : > { %p598_p8 = pneg %p597_p11 }
  0x35   : > { %p604_p4 = por %p603_p3, %p602_p2 }
  0x37   : > { %p605_p1 = pnand %p604_p4, %p598_p8 }
  0x39   : > { %608 = shalt.err (!%p605_p1)
}
  0x3a   : > { %s609_s22 = scalar_lea.vmem %s180_s7, 32  ;;  %s711_s19 = smov [#allocation5]  }
  0x3b   : > { %p610_p5 = scmp.ne.s32.totalorder %s180_s7, %s609_s22  ;;  %s614_s23 = sshll.u32 %s711_s19, 4  ;;  %s615_s23 = int_to_ptr.vmem [resolvable:$false] %s614_s23 }
  0x3c   : > { %s616_s25 = scalar_lea.vmem %s615_s23, 64  ;;  %p617_p7 = scmp.lt.s32.totalorder %s180_s7, %s615_s23 }
  0x3d   : > { %p612_p10 = pnand %p610_p5, %p566_p13  ;;  %p618_p6 = scmp.lt.s32.totalorder %s616_s25, %s609_s22 }
  0x3f   : > { %p613_p11 = pneg %p612_p10  ;;  %p619_p0 = por %p618_p6, %p617_p7 }
  0x41   : > { %p620_p12 = pnand %p619_p0, %p613_p11 }
  0x43   : > { %623 = shalt.err (!%p620_p12)
}
  0x44   : > { %501 = dma.hbm_to_vmem [thread:$0]  (!%p796_p9), %s843_s5, 32, %s180_s7, %s165_s27  }
  0x45   : > { %p951_p8 = scmp.ne.s32.totalorder %s950_s24, 0 }
  0x46   : > { %s190_s26 = sand.u32 (!%p951_p8), 1, %s692_s10   ;;  %p952_p13 = scmp.ne.s32.totalorder (!%p951_p8), %s946_s20, 0 }
  0x47   : > { %188 = sbr.rel (%p951_p8) target bundleno = 179 (0xb3), region = 28  ;;  %s476_s28 = sshll.u32 (!%p951_p8), %s190_s26, 3 }
  0x48   : > { %s191_s4 = scalar_lea.sflag (!%p951_p8), [#allocation3], %s190_s26  ;;  %s194_s6 = scalar_lea.vmem (!%p951_p8), [#allocation2], %s476_s28 }
  0x4e   : > { %675 = dma.done.wait (%p952_p13), %s191_s4, 128  }
  0x4f   : > { %677 = vsyncadd (%p952_p13), %s191_s4, 4294967168  ;;  %s477_s29 = sshll.u32 %s190_s26, 1  ;;  %s200_s3 = scalar_lea.sflag [#allocation6], %s190_s26 }
  0x50   : > { %s872_s30 = scalar_lea.vmem [#allocation5], %s477_s29 }
  0x51   : > { %679 = dma.done.wait (%p952_p13), %s200_s3, 32  }
  0x52   : > { %681 = vsyncadd (%p952_p13), %s200_s3, 4294967264  ;;  %p228_p7 = scmp.eq.s32.totalorder %s700_s12, 0 }
  0x53   : > { %v234_v0 = vlaneseq (%p228_p7)  ;;  %v712_v1 = vmov (%p228_p7), 0.0  }
  0x54   : > { %233 = sbr.rel (!%p228_p7) target bundleno = 91 (0x5b), region = 40 }
  0x55   : > { %vm236_vm0 = vcmp.lt.s32.totalorder (%p228_p7), %v234_v0, 256 }
  0x56   : > { %238 = vst.msk [vmem:[#allocation7] sm:$0x3] (%p228_p7), %vm236_vm0, %v712_v1 }
  0x5b PF: > { %v239_v2 = vld [vmem:[%s194_s6] sm:$0xff]  ;;  %vm244_vm1 = vcmask 1043456   ;;  %v287_v15 = vlaneseq  ;;  %v240_v23 = vld [vmem:[%s872_s30] sm:$0x3]  ;;  %v713_v59 = vmov 0.0   ;;  %s715_s12 = smov [#allocation7]  }
  0x5c   : > { %v242_v3 = vcombine.high %v239_v2, %v239_v2  ;;  %v245_v4 = vsel %vm244_vm1, %v239_v2, -inf  ;;  %vm318_vm4 = vcmp.ne.s32.totalorder %v240_v23, 4294967196  ;;  %v714_v62 = vmov 1966171168   ;;  %s371_s20 = sshll.u32 %s715_s12, 4  ;;  %p897_p9 = scmp.eq.s32.totalorder %s466_s15, 1  ;;  %s372_s20 = int_to_ptr.vmem [resolvable:$true] %s371_s20 }
  0x5d   : > { %v246_v5 = vrot.slane %v245_v4, 4  ;;  %v882_v19 = vshrl.u32 %v287_v15, 7  ;;  %v479_v60 = vsel %vm318_vm4, 1.0, %v713_v59  ;;  %v341_v63 = vunpack.c.l.s4 %v714_v62  ;;  %s624_s5 = scalar_lea.vmem %s372_s20, 32  ;;  %p631_p4 = scmp.lt.s32.totalorder %s372_s20, %s372_s20 }
  0x5e   : > { %v252_v6 = vsel %vm244_vm1, %v242_v3, -inf  ;;  %vm358_vm5 = vcmp.lt.s32.totalorder %v287_v15, 256  ;;  %p625_p6 = scmp.ne.s32.totalorder %s372_s20, %s624_s5  ;;  %p632_p1 = scmp.lt.s32.totalorder %s624_s5, %s624_s5 }
  0x5f   : > { %v247_v7 = vmax.f32 %v245_v4, %v246_v5  ;;  %v253_v8 = vrot.slane %v252_v6, 4  ;;  %v291_v22 = vsub.s32 0, %v882_v19  ;;  %v295_v25 = vsub.s32 1, %v882_v19 }
  0x60   : > { %p626_p2 = pnand %p625_p6, %p897_p9  ;;  %p633_p5 = por %p632_p1, %p631_p4 }
  0x61   : > { %v248_v9 = vrot.slane %v247_v7, 2  ;;  %v254_v10 = vmax.f32 %v252_v6, %v253_v8  ;;  %v292_v26 = vrot.slane %v240_v23, %v291_v22  ;;  %v296_v27 = vrot.slane %v240_v23, %v295_v25 }
  0x62   : > { %v327_v3 = vrot.slane %v479_v60, %v291_v22  ;;  %v342_v8 = vunpack.c.0.s8 %v341_v63  ;;  %p627_p3 = pneg %p626_p2 }
  0x63   : > { %v249_v11 = vmax.f32 %v247_v7, %v248_v9  ;;  %v255_v12 = vrot.slane %v254_v10, 2  ;;  %vm297_vm2 = vcmp.eq.s32.totalorder %v882_v19, %v292_v26  ;;  %vm298_vm3 = vcmp.eq.s32.totalorder %v882_v19, %v296_v27 }
  0x64   : > { %v331_v7 = vrot.slane %v479_v60, %v295_v25  ;;  %p634_p10 = pnand %p633_p5, %p627_p3 }
  0x65   : > { %v250_v13 = vrot.slane %v249_v11, 1  ;;  %v256_v14 = vmax.f32 %v254_v10, %v255_v12  ;;  %v345_v12 = vsub.s32 %v342_v8, %v882_v19 }
  0x67   : > { %v251_v16 = vmax.f32 %v249_v11, %v250_v13  ;;  %v257_v17 = vrot.slane %v256_v14, 1 }
  0x69   : > { %v258_v18 = vmax.f32 %v256_v14, %v257_v17 }
  0x6b   : > { %v261_v20 = vcombine.low %v251_v16, %v258_v18  ;;  %v336_v16 = vld [vmem:[#allocation7] sm:$0x3] }
  0x6d   : > { %v263_v21 = vsub.f32 %v239_v2, %v261_v20 }
  0x6f   : > { %v264_v24 = vmul.f32 1.442695, %v263_v21  ;;  %v300_v28 = vcombine.high %v263_v21, %v263_v21  ;;  %v302_v29 = vsel %vm297_vm2, %v263_v21, 0.0 }
  0x70   : > { %v304_v32 = vsel %vm244_vm1, %v302_v29, 0.0 }
  0x71   : > { %558 = vpow2.f32 %v264_v24  ;;  %v303_v30 = vsel %vm298_vm3, %v300_v28, 0.0  ;;  %v305_v38 = vrot.slane %v304_v32, 4 }
  0x72   : > { %v311_v36 = vsel %vm244_vm1, %v303_v30, 0.0 }
  0x73   : > { %v312_v41 = vrot.slane %v311_v36, 4  ;;  %v306_v44 = vadd.f32 %v305_v38, %v304_v32 }
  0x75   : > { %v313_v47 = vadd.f32 %v312_v41, %v311_v36  ;;  %v307_v50 = vrot.slane %v306_v44, 2 }
  0x77   : > { %v314_v53 = vrot.slane %v313_v47, 2  ;;  %v308_v55 = vadd.f32 %v307_v50, %v306_v44 }
  0x79   : > { %v315_v56 = vadd.f32 %v314_v53, %v313_v47  ;;  %v309_v57 = vrot.slane %v308_v55, 1 }
  0x7b   : > { %v559_v31 = vpop.eup %558  ;;  %v316_v58 = vrot.slane %v315_v56, 1  ;;  %v310_v61 = vadd.f32 %v309_v57, %v308_v55 }
  0x7c   : > { %v267_v33 = vcombine.high %v559_v31, %v559_v31  ;;  %v269_v34 = vsel %vm244_vm1, %v559_v31, 0.0 }
  0x7d   : > { %v270_v35 = vrot.slane %v269_v34, 4  ;;  %v317_v2 = vadd.f32 %v316_v58, %v315_v56 }
  0x7e   : > { %v276_v37 = vsel %vm244_vm1, %v267_v33, 0.0 }
  0x7f   : > { %v271_v39 = vadd.f32 %v270_v35, %v269_v34  ;;  %v277_v40 = vrot.slane %v276_v37, 4 }
  0x81   : > { %v272_v42 = vrot.slane %v271_v39, 2  ;;  %v278_v43 = vadd.f32 %v277_v40, %v276_v37 }
  0x83   : > { %v273_v45 = vadd.f32 %v272_v42, %v271_v39  ;;  %v279_v46 = vrot.slane %v278_v43, 2 }
  0x85   : > { %v274_v48 = vrot.slane %v273_v45, 1  ;;  %v280_v49 = vadd.f32 %v279_v46, %v278_v43 }
  0x87   : > { %v275_v51 = vadd.f32 %v274_v48, %v273_v45  ;;  %v281_v52 = vrot.slane %v280_v49, 1 }
  0x89   : > { %v282_v54 = vadd.f32 %v281_v52, %v280_v49  ;;  %560 = vlog2.f32 %v275_v51 }
  0x8b   : > { %562 = vlog2.f32 %v282_v54 }
  0x93   : > { %v561_v0 = vpop.eup %560 }
  0x94   : > { %v284_v1 = vmul.f32 0.6931472, %v561_v0 }
  0x95   : > { %v563_v4 = vpop.eup %562 }
  0x96   : > { %v286_v5 = vmul.f32 0.6931472, %v563_v4  ;;  %v321_v6 = vsub.f32 %v284_v1, %v310_v61 }
  0x98   : > { %v322_v9 = vsub.f32 %v286_v5, %v317_v2  ;;  %v334_v10 = vmul.f32 %v327_v3, %v321_v6 }
  0x9a   : > { %v335_v11 = vmul.f32 %v331_v7, %v322_v9 }
  0x9c   : > { %v339_v13 = vcombine.low %v334_v10, %v335_v11 }
  0x9e   : > { %v346_v14 = vrot.slane %v339_v13, %v345_v12 }
  0xa0   : > { %v353_v17 = vrot.slane %v346_v14, %v345_v12 }
  0xa2   : > { %v355_v18 = vadd.f32 %v353_v17, %v336_v16 }
  0xa4   : > { %360 = vst.msk [vmem:[#allocation7] sm:$0x3] %vm358_vm5, %v355_v18 }
  0xa5   : > { %637 = shalt.err (!%p634_p10)
}
  0xa6   : > { %s638_s15 = scalar_lea.hbm %s943_s2, 32 }
  0xa7   : > { %p639_p11 = scmp.ne.s32.totalorder %s943_s2, %s638_s15  ;;  %p644_p8 = scmp.lt.u32.totalorder %s638_s15, %s943_s2 }
  0xa9   : > { %p640_p0 = pnand %p639_p11, %p897_p9 }
  0xab   : > { %p641_p12 = pneg %p640_p0 }
  0xad   : > { %p646_p13 = pnand %p644_p8, %p641_p12 }
  0xaf   : > { %649 = shalt.err (!%p646_p13)
}
  0xb0   : > { %492 = dma.vmem_to_hbm [thread:$0]  (%p897_p9), %s372_s20, 32, %s943_s2, [#allocation4]  }
  0xb1   : > { %683 = dma.done.wait (%p897_p9), [#allocation4], 32  }
  0xb2   : > { %685 = vsyncadd (%p897_p9), [#allocation4], 4294967264 }
  0xb3 PF: > { %s19_s14 = sadd.s32 1, %s708_s14   ;;  %s954_s9 = smov %s692_s10 }
  0xb4   : > { %p16_p7 = scmp.ge.s32.totalorder %s19_s14, 4   ;;  %s955_s10 = smov %s696_s11 }
  0xb5   : > { %s956_s11 = smov %s782_s21  ;;  %s957_s12 = smov %s704_s13 }
  0xb6   : > { %s958_s13 = smov %s960_s16  ;;  %18 = sbr.rel (!%p16_p7) target bundleno = 7 (0x7), region = 83 }
  0xbd   :  { %384 = vsyncpa [#allocation3], 1 }
  0xbe   :  { %386 = vsyncpa [#allocation3 + $0x1], 1 }
  0xbf   :  { %387 = vsyncpa [#allocation6], 1 }
  0xc0   :  { %389 = vsyncpa [#allocation6 + $0x1], 1 }
  0xc1   :  { %390 = vsyncpa [#allocation4], 1 }
  0xc2   :  { %392 = vsyncpa [#allocation4 + $0x1], 1 }

</bundles_post_ra>
